<compile_context>
chip_gen: v7x
topology: tpu7x:2x2x1
jax: 0.10.0
libtpu: 0.0.40
codegen_flags: <defaults>
</compile_context>

<pallas_src>
import jax
import jax.numpy as jnp
from jax.experimental import pallas as pl
from jax.experimental.pallas import tpu as pltpu


def _round_up(x: int, m: int) -> int:
    return (x + m - 1) // m * m


def backbone_kernel(ids_ref, mask_ref, table_ref, w_ref, bias_ref, out_ref, emb_sc):
    """Gather embedding rows for this token tile, matmul to H, then bias + ReLU + mask.

    ids_ref   : SMEM [N_pad]                (scalar prefetch) token ids
    mask_ref  : VMEM [tile_n, 1]            padding mask (f32, 0/1)
    table_ref : VMEM [V_pad, E_pad]         embedding table (resident)
    w_ref     : VMEM [E_pad, H_pad]         encoder weight (resident)
    bias_ref  : VMEM [1, H_pad]             encoder bias (resident)
    out_ref   : VMEM [tile_n, H_pad]        output tile (lane-dense on H_pad)
    emb_sc    : VMEM [tile_n, E_pad]        gather scratch
    """
    tile_n = out_ref.shape[0]
    base = pl.program_id(0) * tile_n

    # Row gather into scratch: scalar id read from SMEM drives a dynamic row load from the
    # resident table.  Unrolled so the LLO scheduler can overlap the load/store pairs.
    def gather_row(t, carry):
        tok = ids_ref[base + t]
        emb_sc[pl.ds(t, 1), :] = table_ref[pl.ds(tok, 1), :]
        return carry

    jax.lax.fori_loop(0, tile_n, gather_row, 0, unroll=8)

    # MXU: [tile_n, E_pad] x [E_pad, H_pad]; VPU epilogue fused into a single full-tile store.
    h = jnp.dot(emb_sc[...], w_ref[...], preferred_element_type=jnp.float32)
    h = jnp.maximum(h + bias_ref[...], 0.0)
    out_ref[...] = (h * mask_ref[...]).astype(out_ref.dtype)


def model_backbone_forward(ids, mask, emb_table, w, b, *, tile_n=512):
    """ids: [B,S] int32, mask: [B,S] (bool/float), emb_table: [V,E], w: [E,H], b: [1,H].

    Returns the encoded representation [B, S, H] float32.
    """
    B, S = ids.shape
    V, E = emb_table.shape
    H = w.shape[1]
    N = B * S

    # --- Lane/sublane-aligned operands (wrapper-side layout plumbing only) ---
    E_pad = _round_up(E, 128)
    H_pad = _round_up(H, 128)
    V_pad = _round_up(V, 8)

    table = jnp.pad(emb_table.astype(jnp.float32), ((0, V_pad - V), (0, E_pad - E)))
    w_p = jnp.pad(w.astype(jnp.float32), ((0, E_pad - E), (0, H_pad - H)))
    bias = jnp.pad(b.reshape(1, H).astype(jnp.float32), ((0, 0), (0, H_pad - H)))

    # --- Tile sizing: big tiles (step-overhead bound), but keep >= 2 grid steps so both
    #     TensorCores get work under dimension_semantics=("parallel",). ---
    tile_n = max(8, min(tile_n, _round_up(pl.cdiv(N, 2), 8)))
    N_pad = _round_up(N, tile_n)
    grid = (N_pad // tile_n,)

    ids_flat = jnp.pad(ids.reshape(N).astype(jnp.int32), (0, N_pad - N))
    mask_flat = jnp.pad(mask.reshape(N, 1).astype(jnp.float32),
                        ((0, N_pad - N), (0, 0)))

    # --- Explicit VMEM budget: pipelined buffers are double-buffered; add headroom. ---
    def _buf_bytes(r, c):  # f32, (8, 128) physical tile padding
        return _round_up(r, 8) * _round_up(c, 128) * 4

    vmem_bytes = (
        2 * _buf_bytes(tile_n, 1)        # mask tiles
        + 2 * _buf_bytes(V_pad, E_pad)   # embedding table (resident)
        + 2 * _buf_bytes(E_pad, H_pad)   # encoder weight (resident)
        + 2 * _buf_bytes(1, H_pad)       # bias (resident)
        + 2 * _buf_bytes(tile_n, H_pad)  # output tiles
        + _buf_bytes(tile_n, E_pad)      # gather scratch
    )
    vmem_limit = min(vmem_bytes + (16 << 20), 48 << 20)

    out = pl.pallas_call(
        backbone_kernel,
        out_shape=jax.ShapeDtypeStruct((N_pad, H_pad), jnp.float32),
        grid_spec=pltpu.PrefetchScalarGridSpec(
            num_scalar_prefetch=1,                                      # ids -> SMEM
            grid=grid,
            in_specs=[
                pl.BlockSpec((tile_n, 1), lambda i, ids: (i, 0)),       # mask tile
                pl.BlockSpec((V_pad, E_pad), lambda i, ids: (0, 0)),    # emb table (resident)
                pl.BlockSpec((E_pad, H_pad), lambda i, ids: (0, 0)),    # weight (resident)
                pl.BlockSpec((1, H_pad), lambda i, ids: (0, 0)),        # bias (resident)
            ],
            out_specs=pl.BlockSpec((tile_n, H_pad), lambda i, ids: (i, 0)),
            scratch_shapes=[pltpu.VMEM((tile_n, E_pad), jnp.float32)],  # gather scratch
        ),
        compiler_params=pltpu.CompilerParams(
            dimension_semantics=("parallel",),                          # shard tiles across TCs
            vmem_limit_bytes=vmem_limit,
        ),
    )(ids_flat, mask_flat, table, w_p, bias)

    return out[:N, :H].reshape(B, S, H)


def _reference(ids, mask, emb_table, w, b):
    emb = emb_table[ids]                                                 # [B, S, E]
    h = jnp.maximum(jnp.einsum("bse,eh->bsh", emb, w) + b.reshape(1, 1, -1), 0.0)
    return h * mask.astype(jnp.float32)[..., None]


if __name__ == "__main__":
    key = jax.random.PRNGKey(0)
    k_ids, k_emb, k_w, k_b = jax.random.split(key, 4)

    B, S = 2, 8           # batch, sequence length
    V, E, H = 32, 32, 32  # vocab size, embedding dim, encoder hidden dim

    ids = jax.random.randint(k_ids, (B, S), 0, V, dtype=jnp.int32)
    # mask: last two tokens of the second example are padding
    mask = jnp.ones((B, S), dtype=jnp.float32).at[1, -2:].set(0.0)

    emb_table = jax.random.normal(k_emb, (V, E), dtype=jnp.float32) * 0.1
    w = jax.random.normal(k_w, (E, H), dtype=jnp.float32) * 0.1
    b = jax.random.normal(k_b, (1, H), dtype=jnp.float32) * 0.1

    out = model_backbone_forward(ids, mask, emb_table, w, b)
    out = jax.block_until_ready(out)

    ref = _reference(ids, mask, emb_table, w, b)
    assert out.shape == (B, S, H)
    # In-kernel MXU matmul vs XLA einsum: both near-f32; loosened tolerance covers
    # any difference in accumulation/pass strategy.
    assert jnp.allclose(out, ref, atol=1e-3, rtol=1e-3)

    print("KERNEL_OK")
</pallas_src>

<mosaic_0001>
module attributes {stable_mosaic.version = 11 : i64} {
  func.func @backbone_kernel(%arg0: i32, %arg1: memref<16xi32, #tpu.memory_space<smem>>, %arg2: memref<8x1xf32, #tpu.memory_space<vmem>>, %arg3: memref<32x128xf32, #tpu.memory_space<vmem>>, %arg4: memref<128x128xf32, #tpu.memory_space<vmem>>, %arg5: memref<1x128xf32, #tpu.memory_space<vmem>>, %arg6: memref<8x128xf32, #tpu.memory_space<vmem>>, %arg7: memref<8x128xf32, #tpu.memory_space<vmem>>) attributes {dimension_semantics = [#tpu.dimension_semantics<parallel>], iteration_bounds = array<i64: 2>, scalar_prefetch = 1 : i64, scratch_operands = 1 : i64, tpu.core_type = #tpu.core_type<tc>, window_params = [{transform_indices = @transform_0, window_bounds = array<i64: 8, 1>}, {pipeline_mode = #tpu.pipeline_mode<synchronous>, transform_indices = @transform_1, window_bounds = array<i64: 32, 128>}, {pipeline_mode = #tpu.pipeline_mode<synchronous>, transform_indices = @transform_2, window_bounds = array<i64: 128, 128>}, {pipeline_mode = #tpu.pipeline_mode<synchronous>, transform_indices = @transform_3, window_bounds = array<i64: 1, 128>}, {transform_indices = @transform_4, window_bounds = array<i64: 8, 128>}]} {
    %c8_i32 = arith.constant 8 : i32
    %0 = arith.muli %arg0, %c8_i32 : i32
    %c0_i32 = arith.constant 0 : i32
    %1 = arith.addi %0, %c0_i32 : i32
    %2 = arith.index_cast %1 : i32 to index
    %3 = memref.load %arg1[%2] : memref<16xi32, #tpu.memory_space<smem>>
    %4 = arith.index_cast %3 : i32 to index
    %c0 = arith.constant 0 : index
    %5 = vector.load %arg3[%4, %c0] : memref<32x128xf32, #tpu.memory_space<vmem>>, vector<1x128xf32>
    %6 = arith.index_cast %c0_i32 : i32 to index
    %c0_0 = arith.constant 0 : index
    %7 = vector.load %arg7[%6, %c0_0] : memref<8x128xf32, #tpu.memory_space<vmem>>, vector<1x128xf32>
    tpu.vector_store %arg7[%6, %c0_0], %5 {strides = array<i32>} : memref<8x128xf32, #tpu.memory_space<vmem>>, vector<1x128xf32>,
    %c1_i32 = arith.constant 1 : i32
    %8 = arith.addi %0, %c1_i32 : i32
    %9 = arith.index_cast %8 : i32 to index
    %10 = memref.load %arg1[%9] : memref<16xi32, #tpu.memory_space<smem>>
    %11 = arith.index_cast %10 : i32 to index
    %c0_1 = arith.constant 0 : index
    %12 = vector.load %arg3[%11, %c0_1] : memref<32x128xf32, #tpu.memory_space<vmem>>, vector<1x128xf32>
    %13 = arith.index_cast %c1_i32 : i32 to index
    %c0_2 = arith.constant 0 : index
    %14 = vector.load %arg7[%13, %c0_2] : memref<8x128xf32, #tpu.memory_space<vmem>>, vector<1x128xf32>
    tpu.vector_store %arg7[%13, %c0_2], %12 {strides = array<i32>} : memref<8x128xf32, #tpu.memory_space<vmem>>, vector<1x128xf32>,
    %c2_i32 = arith.constant 2 : i32
    %15 = arith.addi %0, %c2_i32 : i32
    %16 = arith.index_cast %15 : i32 to index
    %17 = memref.load %arg1[%16] : memref<16xi32, #tpu.memory_space<smem>>
    %18 = arith.index_cast %17 : i32 to index
    %c0_3 = arith.constant 0 : index
    %19 = vector.load %arg3[%18, %c0_3] : memref<32x128xf32, #tpu.memory_space<vmem>>, vector<1x128xf32>
    %20 = arith.index_cast %c2_i32 : i32 to index
    %c0_4 = arith.constant 0 : index
    %21 = vector.load %arg7[%20, %c0_4] : memref<8x128xf32, #tpu.memory_space<vmem>>, vector<1x128xf32>
    tpu.vector_store %arg7[%20, %c0_4], %19 {strides = array<i32>} : memref<8x128xf32, #tpu.memory_space<vmem>>, vector<1x128xf32>,
    %c3_i32 = arith.constant 3 : i32
    %22 = arith.addi %0, %c3_i32 : i32
    %23 = arith.index_cast %22 : i32 to index
    %24 = memref.load %arg1[%23] : memref<16xi32, #tpu.memory_space<smem>>
    %25 = arith.index_cast %24 : i32 to index
    %c0_5 = arith.constant 0 : index
    %26 = vector.load %arg3[%25, %c0_5] : memref<32x128xf32, #tpu.memory_space<vmem>>, vector<1x128xf32>
    %27 = arith.index_cast %c3_i32 : i32 to index
    %c0_6 = arith.constant 0 : index
    %28 = vector.load %arg7[%27, %c0_6] : memref<8x128xf32, #tpu.memory_space<vmem>>, vector<1x128xf32>
    tpu.vector_store %arg7[%27, %c0_6], %26 {strides = array<i32>} : memref<8x128xf32, #tpu.memory_space<vmem>>, vector<1x128xf32>,
    %c4_i32 = arith.constant 4 : i32
    %29 = arith.addi %0, %c4_i32 : i32
    %30 = arith.index_cast %29 : i32 to index
    %31 = memref.load %arg1[%30] : memref<16xi32, #tpu.memory_space<smem>>
    %32 = arith.index_cast %31 : i32 to index
    %c0_7 = arith.constant 0 : index
    %33 = vector.load %arg3[%32, %c0_7] : memref<32x128xf32, #tpu.memory_space<vmem>>, vector<1x128xf32>
    %34 = arith.index_cast %c4_i32 : i32 to index
    %c0_8 = arith.constant 0 : index
    %35 = vector.load %arg7[%34, %c0_8] : memref<8x128xf32, #tpu.memory_space<vmem>>, vector<1x128xf32>
    tpu.vector_store %arg7[%34, %c0_8], %33 {strides = array<i32>} : memref<8x128xf32, #tpu.memory_space<vmem>>, vector<1x128xf32>,
    %c5_i32 = arith.constant 5 : i32
    %36 = arith.addi %0, %c5_i32 : i32
    %37 = arith.index_cast %36 : i32 to index
    %38 = memref.load %arg1[%37] : memref<16xi32, #tpu.memory_space<smem>>
    %39 = arith.index_cast %38 : i32 to index
    %c0_9 = arith.constant 0 : index
    %40 = vector.load %arg3[%39, %c0_9] : memref<32x128xf32, #tpu.memory_space<vmem>>, vector<1x128xf32>
    %41 = arith.index_cast %c5_i32 : i32 to index
    %c0_10 = arith.constant 0 : index
    %42 = vector.load %arg7[%41, %c0_10] : memref<8x128xf32, #tpu.memory_space<vmem>>, vector<1x128xf32>
    tpu.vector_store %arg7[%41, %c0_10], %40 {strides = array<i32>} : memref<8x128xf32, #tpu.memory_space<vmem>>, vector<1x128xf32>,
    %c6_i32 = arith.constant 6 : i32
    %43 = arith.addi %0, %c6_i32 : i32
    %44 = arith.index_cast %43 : i32 to index
    %45 = memref.load %arg1[%44] : memref<16xi32, #tpu.memory_space<smem>>
    %46 = arith.index_cast %45 : i32 to index
    %c0_11 = arith.constant 0 : index
    %47 = vector.load %arg3[%46, %c0_11] : memref<32x128xf32, #tpu.memory_space<vmem>>, vector<1x128xf32>
    %48 = arith.index_cast %c6_i32 : i32 to index
    %c0_12 = arith.constant 0 : index
    %49 = vector.load %arg7[%48, %c0_12] : memref<8x128xf32, #tpu.memory_space<vmem>>, vector<1x128xf32>
    tpu.vector_store %arg7[%48, %c0_12], %47 {strides = array<i32>} : memref<8x128xf32, #tpu.memory_space<vmem>>, vector<1x128xf32>,
    %c7_i32 = arith.constant 7 : i32
    %50 = arith.addi %0, %c7_i32 : i32
    %51 = arith.index_cast %50 : i32 to index
    %52 = memref.load %arg1[%51] : memref<16xi32, #tpu.memory_space<smem>>
    %53 = arith.index_cast %52 : i32 to index
    %c0_13 = arith.constant 0 : index
    %54 = vector.load %arg3[%53, %c0_13] : memref<32x128xf32, #tpu.memory_space<vmem>>, vector<1x128xf32>
    %55 = arith.index_cast %c7_i32 : i32 to index
    %c0_14 = arith.constant 0 : index
    %56 = vector.load %arg7[%55, %c0_14] : memref<8x128xf32, #tpu.memory_space<vmem>>, vector<1x128xf32>
    tpu.vector_store %arg7[%55, %c0_14], %54 {strides = array<i32>} : memref<8x128xf32, #tpu.memory_space<vmem>>, vector<1x128xf32>,
    %c8_i32_15 = arith.constant 8 : i32
    %c0_16 = arith.constant 0 : index
    %c0_17 = arith.constant 0 : index
    %57 = vector.load %arg7[%c0_16, %c0_17] : memref<8x128xf32, #tpu.memory_space<vmem>>, vector<8x128xf32>
    %c0_18 = arith.constant 0 : index
    %c0_19 = arith.constant 0 : index
    %58 = vector.load %arg4[%c0_18, %c0_19] : memref<128x128xf32, #tpu.memory_space<vmem>>, vector<128x128xf32>
    %cst = arith.constant dense<0.000000e+00> : vector<8x128xf32>
    %59 = tpu.matmul %57, %58, %cst {dimension_numbers = #tpu.dot_dimension_numbers<[1], [0], [0], [1], [0, 0, 1, 1], [], []>} : vector<8x128xf32>, vector<128x128xf32>, vector<8x128xf32> -> vector<8x128xf32>
    %c0_20 = arith.constant 0 : index
    %c0_21 = arith.constant 0 : index
    %60 = vector.load %arg5[%c0_20, %c0_21] : memref<1x128xf32, #tpu.memory_space<vmem>>, vector<1x128xf32>
    %61 = vector.broadcast %60 : vector<1x128xf32> to vector<8x128xf32>
    %62 = arith.addf %59, %61 : vector<8x128xf32>
    %cst_22 = arith.constant 0.000000e+00 : f32
    %63 = vector.broadcast %cst_22 : f32 to vector<8x128xf32>
    %64 = arith.maximumf %62, %63 : vector<8x128xf32>
    %c0_23 = arith.constant 0 : index
    %c0_24 = arith.constant 0 : index
    %65 = vector.load %arg2[%c0_23, %c0_24] : memref<8x1xf32, #tpu.memory_space<vmem>>, vector<8x1xf32>
    %66 = vector.broadcast %65 : vector<8x1xf32> to vector<8x128xf32>
    %67 = arith.mulf %64, %66 : vector<8x128xf32>
    %c0_25 = arith.constant 0 : index
    %c0_26 = arith.constant 0 : index
    %68 = vector.load %arg6[%c0_25, %c0_26] : memref<8x128xf32, #tpu.memory_space<vmem>>, vector<8x128xf32>
    tpu.vector_store %arg6[%c0_25, %c0_26], %67 {strides = array<i32>} : memref<8x128xf32, #tpu.memory_space<vmem>>, vector<8x128xf32>,
    return
  }
  func.func @transform_0(%arg0: i32, %arg1: memref<16xi32, #tpu.memory_space<smem>>) -> (i32, i32) {
    %c0_i32 = arith.constant 0 : i32
    %c0_i32_0 = arith.constant 0 : i32
    return %arg0, %c0_i32 : i32, i32
  }
  func.func @transform_1(%arg0: i32, %arg1: memref<16xi32, #tpu.memory_space<smem>>) -> (i32, i32) {
    %c0_i32 = arith.constant 0 : i32
    %c0_i32_0 = arith.constant 0 : i32
    %c0_i32_1 = arith.constant 0 : i32
    return %c0_i32, %c0_i32_0 : i32, i32
  }
  func.func @transform_2(%arg0: i32, %arg1: memref<16xi32, #tpu.memory_space<smem>>) -> (i32, i32) {
    %c0_i32 = arith.constant 0 : i32
    %c0_i32_0 = arith.constant 0 : i32
    %c0_i32_1 = arith.constant 0 : i32
    return %c0_i32, %c0_i32_0 : i32, i32
  }
  func.func @transform_3(%arg0: i32, %arg1: memref<16xi32, #tpu.memory_space<smem>>) -> (i32, i32) {
    %c0_i32 = arith.constant 0 : i32
    %c0_i32_0 = arith.constant 0 : i32
    %c0_i32_1 = arith.constant 0 : i32
    return %c0_i32, %c0_i32_0 : i32, i32
  }
  func.func @transform_4(%arg0: i32, %arg1: memref<16xi32, #tpu.memory_space<smem>>) -> (i32, i32) {
    %c0_i32 = arith.constant 0 : i32
    %c0_i32_0 = arith.constant 0 : i32
    return %arg0, %c0_i32 : i32, i32
  }
}

</mosaic_0001>

<bundles_post_ra>
// kernel: tpu_custom_call.1
= control target key start
LH: loop header
LB: loop body
LE: loop exit
PB: predicated region body
PF: predicated region fallthrough
CT: control target
= control target key end

     0   :  { %s1025_s0 = inlined_call_operand.vmem [shape: s32[16], index: 0, kind: input, shape index: {}]   ;;  %s1026_s1 = inlined_call_operand.vmem [shape: f32[16,1], index: 1, kind: input, shape index: {}]   ;;  %s1027_s2 = inlined_call_operand.hbm [shape: f32[32,128], index: 2, kind: input, shape index: {}]   ;;  %s1028_s3 = inlined_call_operand.hbm [shape: f32[128,128], index: 3, kind: input, shape index: {}]   ;;  %s1029_s4 = inlined_call_operand.vmem [shape: f32[1,128], index: 4, kind: input, shape index: {}]   ;;  %s1030_s5 = inlined_call_operand.hbm [shape: f32[16,128], index: 5, kind: output, shape index: {}]  }
   0x1   :  { %s10_s20 = sshll.u32 %s1025_s0, 4  ;;  %s11_s20 = int_to_ptr.vmem [resolvable:$true] %s10_s20 }
   0x2   :  { %s636_s21 = scalar_lea.vmem %s11_s20, 16  ;;  %p641_p1 = scmp.lt.s32.totalorder %s11_s20, %s11_s20 }
   0x3   :  { %p637_p0 = scmp.ne.s32.totalorder %s11_s20, %s636_s21  ;;  %p642_p2 = scmp.lt.s32.totalorder %s636_s21, %s636_s21 }
   0x5   :  { %p643_p3 = por %p642_p2, %p641_p1 }
   0x7   :  { %p644_p4 = pnand %p643_p3, %p637_p0 }
   0x9   :  { %647 = shalt.err (!%p644_p4)  }
   0xa   :  { %s778_s22 = smov [#allocation4]  }
   0xb   :  { %13 = dma.vmem_to_smem %s11_s20, 16, %s778_s22, [#allocation3] }
   0xc   :  { %748 = dma.done.wait [#allocation3], 16 }
   0xd   :  { %749 = vsyncadd [#allocation3], 4294967280 }
   0xe   :  { %15 = sfence }
   0xf   :  { %16 = vsyncpa [#allocation6], 0 }
  0x10   :  { %17 = vsyncpa [#allocation9], 0 }
  0x11   :  { %18 = vsyncpa [#allocation7], 0 }
  0x12   :  { %20 = vsyncpa [#allocation7 + $0x1], 0  ;;  %s821_s23 = smov 0   ;;  %s823_s0 = smov 0  }
  0x13   :  { %s825_s24 = smov 0   ;;  %s827_s25 = smov 0  }
  0x14 LB: > { %s842_s26 = sadd.s32 4294967295, %s776_s25   ;;  %s476_s27 = sadd.s32 4294967294, %s776_s25   ;;  %s776_s25 = sphi %s827_s25, %s1048_s25   ;;  %s772_s24 = sphi %s825_s24, %s1047_s24   ;;  %s768_s0 = sphi %s823_s0, %s1046_s0   ;;  %s764_s23 = sphi %s821_s23, %s1045_s23  }
  0x15   : > { %s846_s28 = sadd.s32 1, %s776_s25   ;;  %s122_s29 = sadd.s32 1, %s772_s24 }
  0x16   : > { %s119_s30 = ssub.s32 %s776_s25, %s846_s28  ;;  %p132_p5 = scmp.ne.s32.totalorder %s772_s24, %s768_s0 }
  0x17   : > { %p120_p6 = scmp.eq.s32.totalorder %s119_s30, 0  ;;  %p133_p7 = scmp.eq.s32.totalorder %s842_s26, 1 }
  0x18   : > { %p138_p8 = scmp.ne.s32.totalorder %s768_s0, %s764_s23  ;;  %p139_p9 = scmp.eq.s32.totalorder %s476_s27, 1 }
  0x19   : > { %s857_s6 = scalar_select %p120_p6, %s772_s24, %s122_s29  }
  0x1a   : > { %p859_p10 = por %p133_p7, %p132_p5  ;;  %p863_p11 = por %p139_p9, %p138_p8 }
  0x1b   : > { %p477_p12 = scmp.ge.s32.totalorder %s776_s25, 1  ;;  %p146_p13 = scmp.lt.s32.totalorder %s776_s25, 3 }
  0x1c   : > { %s1034_s7 = scalar_select %p859_p10, 1, 0 }
  0x1d   : > { %s1035_s8 = scalar_select %p863_p11, 1, 0 }
  0x1e   : > { %p1031_p0 = scmp.eq.s32.totalorder %s842_s26, 0  ;;  %p870_p1 = pnand %p477_p12, %p146_p13 }
  0x1f   : > { %s779_s10 = smov [#allocation5]   ;;  %s780_s13 = smov [#allocation8]  }
  0x20   : > { %s1036_s9 = scalar_select %p870_p1, 1, 0 }
  0x21   : > { %s158_s11 = sshll.u32 %s779_s10, 4  ;;  %p578_p2 = pneg %p870_p1  ;;  %s159_s11 = int_to_ptr.vmem [resolvable:$true] %s158_s11 }
  0x22   : > { %s171_s14 = sshll.u32 %s780_s13, 4  ;;  %s648_s17 = scalar_lea.hbm %s1027_s2, 512  ;;  %s882_s14 = int_to_ptr.vmem [resolvable:$true] %s171_s14 }
  0x23   : > { %p878_p3 = pnand %p1031_p0, %p578_p2  ;;  %p649_p4 = scmp.ne.s32.totalorder %s1027_s2, %s648_s17 }
  0x24   : > { %p655_p8 = scmp.lt.u32.totalorder %s648_s17, %s1027_s2 }
  0x25   : > { %p650_p5 = pneg %p878_p3 }
  0x27   : > { %p651_p6 = pnand %p650_p5, %p649_p4 }
  0x29   : > { %p652_p7 = pneg %p651_p6 }
  0x2b   : > { %p657_p9 = pnand %p655_p8, %p652_p7 }
  0x2d   : > { %660 = shalt.err (!%p657_p9)
}
  0x2e   : > { %s661_s22 = scalar_lea.vmem %s159_s11, 512  ;;  %p669_p0 = scmp.lt.s32.totalorder %s159_s11, %s159_s11 }
  0x2f   : > { %p662_p12 = scmp.ne.s32.totalorder %s159_s11, %s661_s22  ;;  %p670_p11 = scmp.lt.s32.totalorder %s661_s22, %s661_s22 }
  0x31   : > { %p664_p13 = pnand %p662_p12, %p650_p5  ;;  %p671_p10 = por %p670_p11, %p669_p0 }
  0x33   : > { %p665_p2 = pneg %p664_p13 }
  0x35   : > { %p672_p1 = pnand %p671_p10, %p665_p2 }
  0x37   : > { %675 = shalt.err (!%p672_p1)
}
  0x38   : > { %s781_s27 = smov 128   ;;  %s782_s29 = smov 8  }
  0x39   : > { %581 = dma.hbm_to_vmem [thread:$0]  (!%p878_p3), %s1027_s2, 512, %s159_s11, [#allocation6], %s781_s27, %s781_s27, %s782_s29  }
  0x3a   : > { %s676_s16 = scalar_lea.hbm %s1028_s3, 2048 }
  0x3b   : > { %p677_p4 = scmp.ne.s32.totalorder %s1028_s3, %s676_s16  ;;  %p683_p0 = scmp.lt.u32.totalorder %s676_s16, %s1028_s3 }
  0x3d   : > { %p679_p10 = pnand %p677_p4, %p650_p5 }
  0x3f   : > { %p680_p11 = pneg %p679_p10 }
  0x41   : > { %p685_p1 = pnand %p683_p0, %p680_p11 }
  0x43   : > { %688 = shalt.err (!%p685_p1)
}
  0x44   : > { %s689_s11 = scalar_lea.vmem %s882_s14, 2048  ;;  %p697_p9 = scmp.lt.s32.totalorder %s882_s14, %s882_s14 }
  0x45   : > { %p690_p6 = scmp.ne.s32.totalorder %s882_s14, %s689_s11  ;;  %p698_p12 = scmp.lt.s32.totalorder %s689_s11, %s689_s11 }
  0x47   : > { %p692_p7 = pnand %p690_p6, %p650_p5  ;;  %p699_p13 = por %p698_p12, %p697_p9 }
  0x49   : > { %p693_p8 = pneg %p692_p7 }
  0x4b   : > { %p700_p2 = pnand %p699_p13, %p693_p8 }
  0x4d   : > { %703 = shalt.err (!%p700_p2)
}
  0x4e   : > { %584 = dma.hbm_to_vmem [thread:$0]  (!%p878_p3), %s1028_s3, 2048, %s882_s14, [#allocation9], %s781_s27, %s781_s27, %s782_s29  }
  0x4f   : > { %p1038_p4 = scmp.ne.s32.totalorder %s1036_s9, 0 }
  0x50   : > { %p1039_p10 = scmp.eq.s32.totalorder (!%p1038_p4), %s842_s26, 0 }
  0x51   : > { %197 = sbr.rel (%p1038_p4) target bundleno = 360 (0x168), region = 36 }
  0x58   : > { %751 = dma.done.wait (%p1039_p10), [#allocation6], 512   ;;  %p1040_p5 = pmov %p1039_p10 }
  0x5a   : > { %753 = vsyncadd (%p1040_p5), [#allocation6], 4294966784  ;;  %p1041_p11 = pmov %p1040_p5 }
  0x5b   : > { %p1042_p0 = pmov %p1040_p5 }
  0x5c   : > { %755 = dma.done.wait (%p1041_p11), [#allocation9], 2048  }
  0x5d   : > { %757 = vsyncadd (%p1042_p0), [#allocation9], 4294965248  ;;  %s486_s12 = sshll.u32 %s842_s26, 3  ;;  %v783_v0 = vmov 0.0|0.0   ;;  %vm784_vm0 = vmmov 0   ;;  %v785_v1 = vmov 0.0  }
  0x5e   : > { %544 = vmatprep.subr.bf16.mxu0 %v783_v0  ;;  %541 = vmatprep.mubr.msk.f32.mxu0 %vm784_vm0, %v785_v1  ;;  %s231_s9 = sld [smem:[#allocation4 + %s486_s12]]  ;;  %s235_s14 = sadd.s32 1, %s486_s12  ;;  %v786_v2 = vmov 0   ;;  %v271_v3 = vld [vmem:[#allocation8] sm:$0xff]  ;;  %v272_v4 = vld [vmem:[#allocation8 + $0x8] sm:$0xff]  ;;  %v273_v5 = vld [vmem:[#allocation8 + $0x10] sm:$0xff] }
  0x5f   : > { %s236_s27 = sld [smem:[#allocation4 + %s235_s14]]  ;;  %s240_s29 = sadd.s32 2, %s486_s12  ;;  %635 = vset.pattern.permute.xlu0 %v786_v2  ;;  %v545_v6 = vpack.c.bf16 %v272_v4, %v271_v3  ;;  %v274_v7 = vld [vmem:[#allocation8 + $0x18] sm:$0xff]  ;;  %v275_v9 = vld [vmem:[#allocation8 + $0x20] sm:$0xff]  ;;  %v276_v10 = vld [vmem:[#allocation8 + $0x28] sm:$0xff] }
  0x60   : > { %s943_s30 = sld [smem:[#allocation4 + %s240_s29]]  ;;  %s245_s10 = sadd.s32 3, %s486_s12  ;;  %v548_v8 = vpack.c.bf16 %v274_v7, %v273_v5  ;;  %v551_v16 = vpack.c.bf16 %v276_v10, %v275_v9  ;;  %v277_v18 = vld [vmem:[#allocation8 + $0x30] sm:$0xff]  ;;  %v278_v19 = vld [vmem:[#allocation8 + $0x38] sm:$0xff]  ;;  %v279_v23 = vld [vmem:[#allocation8 + $0x40] sm:$0xff] }
  0x61   : > { %s945_s13 = sld [smem:[#allocation4 + %s245_s10]]  ;;  %s250_s15 = sadd.s32 4, %s486_s12  ;;  %546 = vmatpush3.bf16.msra.mxu0 %v545_v6  ;;  %v554_v22 = vpack.c.bf16 %v278_v19, %v277_v18  ;;  %v280_v24 = vld [vmem:[#allocation8 + $0x48] sm:$0xff]  ;;  %v281_v27 = vld [vmem:[#allocation8 + $0x50] sm:$0xff]  ;;  %v282_v28 = vld [vmem:[#allocation8 + $0x58] sm:$0xff] }
  0x62   : > { %s947_s16 = sld [smem:[#allocation4 + %s250_s15]]  ;;  %s255_s17 = sadd.s32 5, %s486_s12  ;;  %547 = vmatprep.subr.bf16.mxu0 %v783_v0  ;;  %v557_v26 = vpack.c.bf16 %v280_v24, %v279_v23  ;;  %v560_v29 = vpack.c.bf16 %v282_v28, %v281_v27  ;;  %v283_v30 = vld [vmem:[#allocation8 + $0x60] sm:$0xff]  ;;  %v284_v31 = vld [vmem:[#allocation8 + $0x68] sm:$0xff]  ;;  %v285_v33 = vld [vmem:[#allocation8 + $0x70] sm:$0xff] }
  0x63   : > { %s949_s18 = sld [smem:[#allocation4 + %s255_s17]]  ;;  %s260_s19 = sadd.s32 6, %s486_s12  ;;  %v563_v32 = vpack.c.bf16 %v284_v31, %v283_v30  ;;  %v286_v34 = vld [vmem:[#allocation8 + $0x78] sm:$0xff] }
  0x64   : > { %s951_s20 = sld [smem:[#allocation4 + %s260_s19]]  ;;  %s265_s11 = sadd.s32 7, %s486_s12  ;;  %v566_v35 = vpack.c.bf16 %v286_v34, %v285_v33  ;;  %v487_v37 = vld [vmem:[%s1029_s4] ss:$0 sm:$0xff] }
  0x65   : > { %s953_s21 = sld [smem:[#allocation4 + %s265_s11]]  ;;  %s232_s22 = scalar_lea.vmem [#allocation5], %s231_s9  ;;  %549 = vmatpush3.bf16.msra.mxu0 %v548_v8 }
  0x66   : > { %v233_v11 = vld [vmem:[%s232_s22] sm:$0x1]  ;;  %s237_s14 = scalar_lea.vmem [#allocation5], %s236_s27  ;;  %p226_p3 = scmp.lt.s32.totalorder %s842_s26, 1  ;;  %550 = vmatprep.subr.bf16.mxu0 %v783_v0 }
  0x67   : > { %v238_v12 = vld [vmem:[%s237_s14] sm:$0x1]  ;;  %234 = vst [vmem:[#allocation2] sm:$0x1] %v233_v11  ;;  %s242_s29 = scalar_lea.vmem [#allocation5], %s943_s30  ;;  %s247_s12 = scalar_lea.vmem [#allocation5], %s945_s13 }
  0x68   : > { %239 = vst [vmem:[#allocation2 + $0x1] sm:$0x1] %v238_v12  ;;  %v243_v13 = vld [vmem:[%s242_s29] sm:$0x1]  ;;  %s252_s10 = scalar_lea.vmem [#allocation5], %s947_s16  ;;  %s223_s19 = sand.u32 1, %s768_s0  }
  0x69   : > { %v248_v14 = vld [vmem:[%s247_s12] sm:$0x1]  ;;  %244 = vst [vmem:[#allocation2 + $0x2] sm:$0x1] %v243_v13  ;;  %s257_s9 = scalar_lea.vmem [#allocation5], %s949_s18  ;;  %552 = vmatpush3.bf16.msra.mxu0 %v551_v16  ;;  %s489_s22 = sshll.u32 %s842_s26, 7 }
  0x6a   : > { %v253_v15 = vld [vmem:[%s252_s10] sm:$0x1]  ;;  %249 = vst [vmem:[#allocation2 + $0x3] sm:$0x1] %v248_v14  ;;  %s262_s27 = scalar_lea.vmem [#allocation5], %s951_s20  ;;  %553 = vmatprep.subr.bf16.mxu0 %v783_v0  ;;  %s484_s20 = sshll.u32 %s223_s19, 3 }
  0x6b   : > { %254 = vst [vmem:[#allocation2 + $0x4] sm:$0x1] %v253_v15  ;;  %v258_v17 = vld [vmem:[%s257_s9] sm:$0x1]  ;;  %s267_s30 = scalar_lea.vmem [#allocation5], %s953_s21  ;;  %s225_s14 = scalar_lea.vmem [#allocation10], %s484_s20 }
  0x6c   : > { %259 = vst [vmem:[#allocation2 + $0x5] sm:$0x1] %v258_v17  ;;  %v263_v20 = vld [vmem:[%s262_s27] sm:$0x1]  ;;  %s227_s13 = scalar_select %p226_p3, %s842_s26, 1 }
  0x6d   : > { %264 = vst [vmem:[#allocation2 + $0x6] sm:$0x1] %v263_v20  ;;  %v268_v21 = vld [vmem:[%s267_s30] sm:$0x1]  ;;  %555 = vmatpush3.bf16.msra.mxu0 %v554_v22  ;;  %s387_s29 = sshll.u32 %s225_s14, 4  ;;  %s983_s9 = scalar_lea.hbm %s1030_s5, %s489_s22  ;;  %s985_s29 = int_to_ptr.vmem [resolvable:$true] %s387_s29 }
  0x6e   : > { %269 = vst [vmem:[#allocation2 + $0x7] sm:$0x1] %v268_v21  ;;  %s485_s15 = sshll.u32 %s227_s13, 3  ;;  %556 = vmatprep.subr.bf16.mxu0 %v783_v0  ;;  %s374_s27 = scalar_lea.sflag [#allocation7], %s223_s19 }
  0x6f   : > { %s229_s18 = scalar_lea.vmem %s1026_s1, %s485_s15  ;;  %s704_s30 = scalar_lea.vmem %s985_s29, 128 }
  0x70   : > { %v365_v25 = vld [vmem:[%s229_s18] sm:$0xff]  ;;  %p705_p1 = scmp.ne.s32.totalorder %s985_s29, %s704_s30  ;;  %p1043_p6 = scmp.ne.s32.totalorder %s1034_s7, 0 }
  0x71   : > { %368 = vperm.xlu0 %635, %v365_v25   ;;  %558 = vmatpush3.bf16.msra.mxu0 %v557_v26  ;;  %s787_s26 = smov [#allocation10]  }
  0x72   : > { %559 = vmatprep.subr.bf16.mxu0 %v783_v0  ;;  %p706_p7 = pnand %p705_p1, %p1043_p6  ;;  %s708_s13 = sshll.u32 %s787_s26, 4  ;;  %s709_s13 = int_to_ptr.vmem [resolvable:$false] %s708_s13 }
  0x73   : > { %s710_s15 = scalar_lea.vmem %s709_s13, 256  ;;  %p711_p9 = scmp.lt.s32.totalorder %s985_s29, %s709_s13 }
  0x74   : > { %p707_p8 = pneg %p706_p7  ;;  %p712_p12 = scmp.lt.s32.totalorder %s710_s15, %s704_s30 }
  0x75   : > { %561 = vmatpush3.bf16.msra.mxu0 %v560_v29  ;;  %v270_v36 = vld [vmem:[#allocation2] sm:$0xff] }
  0x76   : > { %562 = vmatprep.subr.bf16.mxu0 %v783_v0  ;;  %p713_p13 = por %p712_p12, %p711_p9 }
  0x78   : > { %p714_p2 = pnand %p713_p13, %p707_p8 }
  0x79   : > { %564 = vmatpush3.bf16.msra.mxu0 %v563_v32 }
  0x7a   : > { %565 = vmatprep.subr.bf16.mxu0 %v783_v0 }
  0x7d   : > { %567 = vmatpush3.bf16.msra.mxu0 %v566_v35 }
  0x80   : > { %542 = vmatmul.mubr.f32.vlgmr.msra.gmra.mrb[0].mxu0 %v270_v36 }
  0xf0   : > { %v369_v41 = vpop.permute.xlu0 %368 }
 0x153   : > { %v360_v38 = vpop.f32.mrb[0].mxu0 }
 0x154   : > { %v361_v39 = vadd.f32 %v487_v37, %v360_v38  ;;  %v543_v40 = vpop.f32.mrb[1].mxu0 }
 0x156   : > { %v364_v42 = vmax.f32 %v361_v39, 0.0 }
 0x158   : > { %v371_v43 = vmul.f32 %v369_v41, %v364_v42 }
 0x15a   : > { %372 = vst [vmem:[%s225_s14] sm:$0xff] %v371_v43 }
 0x15b   : > { %717 = shalt.err (!%p714_p2)
}
 0x15c   : > { %s718_s16 = scalar_lea.hbm %s983_s9, 128  ;;  %s722_s19 = scalar_lea.hbm %s1030_s5, 256 }
 0x15d   : > { %p719_p4 = scmp.ne.s32.totalorder %s983_s9, %s718_s16  ;;  %p723_p11 = scmp.lt.u32.totalorder %s983_s9, %s1030_s5 }
 0x15e   : > { %p724_p0 = scmp.lt.u32.totalorder %s722_s19, %s718_s16  ;;  %p726_p1 = scmp.lt.u32.totalorder %s718_s16, %s983_s9 }
 0x15f   : > { %p720_p10 = pnand %p719_p4, %p1043_p6 }
 0x160   : > { %p725_p3 = por %p724_p0, %p723_p11 }
 0x161   : > { %p721_p5 = pneg %p720_p10 }
 0x162   : > { %p727_p7 = por %p726_p1, %p725_p3 }
 0x164   : > { %p728_p8 = pnand %p727_p7, %p721_p5 }
 0x166   : > { %731 = shalt.err (!%p728_p8)
}
 0x167   : > { %576 = dma.vmem_to_hbm [thread:$0]  (%p1043_p6), %s985_s29, 128, %s983_s9, %s374_s27  }
 0x168 PF: > { %p593_p9 = scmp.ge.s32.totalorder %s776_s25, 2  ;;  %s399_s21 = sand.u32 1, %s764_s23  }
 0x169   : > { %p1044_p12 = scmp.ne.s32.totalorder %s1035_s8, 0  ;;  %s400_s22 = scalar_lea.sflag [#allocation7], %s399_s21 }
 0x16b   : > { %p586_p13 = pnand %p593_p9, %p1044_p12 }
 0x16d   : > { %759 = dma.done.wait (!%p586_p13), %s400_s22, 128  }
 0x16e   : > { %761 = vsyncadd (!%p586_p13), %s400_s22, 4294967168  ;;  %p23_p2 = scmp.ge.s32.totalorder %s846_s28, 4   ;;  %s1045_s23 = smov %s768_s0 }
 0x16f   : > { %s1046_s0 = smov %s772_s24  ;;  %s1047_s24 = smov %s857_s6 }
 0x170   : > { %s1048_s25 = smov %s846_s28  ;;  %25 = sbr.rel (!%p23_p2) target bundleno = 20 (0x14), region = 88 }
 0x177   :  { %405 = vsyncpa [#allocation6], 1 }
 0x178   :  { %407 = vsyncpa [#allocation6 + $0x1], 1 }
 0x179   :  { %408 = vsyncpa [#allocation9], 1 }
 0x17a   :  { %409 = vsyncpa [#allocation7], 1 }
 0x17b   :  { %411 = vsyncpa [#allocation7 + $0x1], 1 }

</bundles_post_ra>
